<compile_context>
chip_gen: v7x
topology: tpu7x:2x2x1
jax: 0.10.0
libtpu: 0.0.40
codegen_flags: <defaults>
</compile_context>

<pallas_src>
import jax
import jax.numpy as jnp
from jax.experimental import pallas as pl
from jax.experimental.pallas import tpu as pltpu


def _round_up(n, m):
    return ((n + m - 1) // m) * m


def controller_kernel(x_ref, w_ref, b_ref, scale_ref, shift_ref, o_ref):
    # (TR, K) @ (K, N) on the MXU, accumulate in f32. K = P*D, N = P*3.
    raw = jnp.dot(x_ref[...], w_ref[...], preferred_element_type=jnp.float32)
    raw = raw + b_ref[...]                      # (TR, N) + (1, N)
    # tanh pre-scale is already folded into W/b, so a single sigmoid pass (EUP)
    # followed by one fused mul-add gives all three activations:
    #   col 0: 2*sigmoid(2z) - 1 = tanh(z);  col 1: sigmoid(z);  col 2: 0.8*sigmoid(z)
    s = jax.nn.sigmoid(raw)
    o_ref[...] = (s * scale_ref[...] + shift_ref[...]).astype(o_ref.dtype)


def controller_forward(x, w, b, *, block_rows=4096):
    """x: (B, state_dim) f32, w: (state_dim, 3) f32, b: (3,) f32 -> (B, 3) f32.

    block_rows is measured in *packed* rows (each packed row = P original rows).
    """
    B, D = x.shape
    A = w.shape[1]
    assert A == 3, "Controller activations are defined for action_dim == 3"

    # Activation constants (wrapper-side only; nothing is captured by the kernel).
    pre = jnp.array([2.0, 1.0, 1.0], jnp.float32)         # tanh(z)=2*sigmoid(2z)-1
    post_scale = jnp.array([2.0, 1.0, 0.8], jnp.float32)
    post_shift = jnp.array([-1.0, 0.0, 0.0], jnp.float32)

    w_eff = w.astype(jnp.float32) * pre[None, :]           # fold pre-scale into params
    b_eff = b.astype(jnp.float32) * pre

    # Row-packing factor: pack P consecutive rows into one 128-lane row when possible.
    P = 128 // D if (0 < D <= 128 and 128 % D == 0) else 1

    # Pad B to a multiple of P only if needed (tiny; no pad in the common case).
    Bp = _round_up(B, P)
    if Bp != B:
        x = jnp.pad(x, ((0, Bp - B), (0, 0)))
    R = Bp // P
    xp = x.reshape(R, P * D)                                # free contiguous reshape

    # Pad packed rows to a sublane multiple only when a tiled (multi-block) grid
    # actually requires it.
    if R > 8 and R % 8 != 0:
        R8 = _round_up(R, 8)
        xp = jnp.pad(xp, ((0, R8 - R), (0, 0)))
        R = R8

    # Block-diagonal weight (P copies of w_eff on the diagonal) and tiled vectors.
    w_pack = jnp.kron(jnp.eye(P, dtype=jnp.float32), w_eff) if P > 1 else w_eff
    b_pack = jnp.tile(b_eff, P).reshape(1, P * A)
    scale_pack = jnp.tile(post_scale, P).reshape(1, P * A)
    shift_pack = jnp.tile(post_shift, P).reshape(1, P * A)

    K = P * D
    N = P * A

    # Batch tile (packed rows): big enough to amortize per-step overhead, small
    # enough for the 16 MiB scoped-VMEM default; split in two when a single tile
    # would cover everything so both TensorCores get work on v7x.
    if R <= 8:
        tr = R                                  # full-dim block (legal for any R)
    else:
        tr = min(_round_up(block_rows, 8), R)   # R is a multiple of 8 here
        if tr >= R and R >= 16:
            tr = _round_up(pl.cdiv(R, 2), 8)

    grid = (pl.cdiv(R, tr),)

    out = pl.pallas_call(
        controller_kernel,
        out_shape=jax.ShapeDtypeStruct((R, N), jnp.float32),
        grid=grid,
        in_specs=[
            pl.BlockSpec((tr, K), lambda i: (i, 0)),   # x: streamed, lane-dense
            pl.BlockSpec((K, N), lambda i: (0, 0)),    # block-diag W: resident
            pl.BlockSpec((1, N), lambda i: (0, 0)),    # bias: resident
            pl.BlockSpec((1, N), lambda i: (0, 0)),    # post-sigmoid scale: resident
            pl.BlockSpec((1, N), lambda i: (0, 0)),    # post-sigmoid shift: resident
        ],
        out_specs=pl.BlockSpec((tr, N), lambda i: (i, 0)),
        compiler_params=pltpu.CompilerParams(
            dimension_semantics=("parallel",),         # megacore sharding on v7x
        ),
    )(xp, w_pack, b_pack, scale_pack, shift_pack)

    # Un-pack rows (free reshape) and drop any padding rows.
    return out.reshape(R * P, A)[:B]


def reference_forward(x, w, b):
    raw = x @ w + b
    steering = jnp.tanh(raw[:, 0:1])
    gas = jax.nn.sigmoid(raw[:, 1:2])
    brake = jax.nn.sigmoid(raw[:, 2:3]) * 0.8
    return jnp.concatenate([steering, gas, brake], axis=1)


if __name__ == "__main__":
    state_dim = 32
    action_dim = 3
    batch = 16  # small demo shape; wrapper packs/tiles for any B

    key = jax.random.PRNGKey(0)
    kx, kw, kb = jax.random.split(key, 3)

    # Deterministic parameter init (PyTorch-Linear-style uniform bound).
    bound = 1.0 / (state_dim ** 0.5)
    w = jax.random.uniform(kw, (state_dim, action_dim), jnp.float32, -bound, bound)
    b = jax.random.uniform(kb, (action_dim,), jnp.float32, -bound, bound)
    x = jax.random.normal(kx, (batch, state_dim), jnp.float32)

    out = controller_forward(x, w, b)
    out = jax.block_until_ready(out)

    ref = reference_forward(x, w, b)
    assert out.shape == (batch, action_dim), out.shape
    assert jnp.allclose(out, ref, atol=1e-5, rtol=1e-5), (out, ref)

    print("KERNEL_OK")
</pallas_src>

<mosaic_0001>
module attributes {stable_mosaic.version = 11 : i64} {
  func.func @controller_kernel(%arg0: i32, %arg1: memref<4x128xf32, #tpu.memory_space<vmem>>, %arg2: memref<128x12xf32, #tpu.memory_space<vmem>>, %arg3: memref<1x12xf32, #tpu.memory_space<vmem>>, %arg4: memref<1x12xf32, #tpu.memory_space<vmem>>, %arg5: memref<1x12xf32, #tpu.memory_space<vmem>>, %arg6: memref<4x12xf32, #tpu.memory_space<vmem>>) attributes {dimension_semantics = [#tpu.dimension_semantics<parallel>], iteration_bounds = array<i64: 1>, scalar_prefetch = 0 : i64, scratch_operands = 0 : i64, tpu.core_type = #tpu.core_type<tc>, window_params = [{transform_indices = @transform_0, window_bounds = array<i64: 4, 128>}, {pipeline_mode = #tpu.pipeline_mode<synchronous>, transform_indices = @transform_1, window_bounds = array<i64: 128, 12>}, {pipeline_mode = #tpu.pipeline_mode<synchronous>, transform_indices = @transform_2, window_bounds = array<i64: 1, 12>}, {pipeline_mode = #tpu.pipeline_mode<synchronous>, transform_indices = @transform_3, window_bounds = array<i64: 1, 12>}, {pipeline_mode = #tpu.pipeline_mode<synchronous>, transform_indices = @transform_4, window_bounds = array<i64: 1, 12>}, {transform_indices = @transform_5, window_bounds = array<i64: 4, 12>}]} {
    %c0 = arith.constant 0 : index
    %c0_0 = arith.constant 0 : index
    %0 = vector.load %arg1[%c0, %c0_0] : memref<4x128xf32, #tpu.memory_space<vmem>>, vector<4x128xf32>
    %c0_1 = arith.constant 0 : index
    %c0_2 = arith.constant 0 : index
    %1 = vector.load %arg2[%c0_1, %c0_2] : memref<128x12xf32, #tpu.memory_space<vmem>>, vector<128x12xf32>
    %cst = arith.constant dense<0.000000e+00> : vector<4x12xf32>
    %2 = tpu.matmul %0, %1, %cst {dimension_numbers = #tpu.dot_dimension_numbers<[1], [0], [0], [1], [0, 0, 1, 1], [], []>} : vector<4x128xf32>, vector<128x12xf32>, vector<4x12xf32> -> vector<4x12xf32>
    %c0_3 = arith.constant 0 : index
    %c0_4 = arith.constant 0 : index
    %3 = vector.load %arg3[%c0_3, %c0_4] : memref<1x12xf32, #tpu.memory_space<vmem>>, vector<1x12xf32>
    %4 = vector.broadcast %3 : vector<1x12xf32> to vector<4x12xf32>
    %5 = arith.addf %2, %4 : vector<4x12xf32>
    %6 = arith.negf %5 : vector<4x12xf32>
    %7 = math.exp %6 : vector<4x12xf32>
    %cst_5 = arith.constant 1.000000e+00 : f32
    %8 = vector.broadcast %cst_5 : f32 to vector<4x12xf32>
    %9 = arith.addf %8, %7 : vector<4x12xf32>
    %10 = arith.divf %8, %9 : vector<4x12xf32>
    %c0_6 = arith.constant 0 : index
    %c0_7 = arith.constant 0 : index
    %11 = vector.load %arg4[%c0_6, %c0_7] : memref<1x12xf32, #tpu.memory_space<vmem>>, vector<1x12xf32>
    %12 = vector.broadcast %11 : vector<1x12xf32> to vector<4x12xf32>
    %13 = arith.mulf %10, %12 : vector<4x12xf32>
    %c0_8 = arith.constant 0 : index
    %c0_9 = arith.constant 0 : index
    %14 = vector.load %arg5[%c0_8, %c0_9] : memref<1x12xf32, #tpu.memory_space<vmem>>, vector<1x12xf32>
    %15 = vector.broadcast %14 : vector<1x12xf32> to vector<4x12xf32>
    %16 = arith.addf %13, %15 : vector<4x12xf32>
    %c0_10 = arith.constant 0 : index
    %c0_11 = arith.constant 0 : index
    %17 = vector.load %arg6[%c0_10, %c0_11] : memref<4x12xf32, #tpu.memory_space<vmem>>, vector<4x12xf32>
    tpu.vector_store %arg6[%c0_10, %c0_11], %16 {strides = array<i32>} : memref<4x12xf32, #tpu.memory_space<vmem>>, vector<4x12xf32>,
    return
  }
  func.func @transform_0(%arg0: i32) -> (i32, i32) {
    %c0_i32 = arith.constant 0 : i32
    %c0_i32_0 = arith.constant 0 : i32
    return %arg0, %c0_i32 : i32, i32
  }
  func.func @transform_1(%arg0: i32) -> (i32, i32) {
    %c0_i32 = arith.constant 0 : i32
    %c0_i32_0 = arith.constant 0 : i32
    %c0_i32_1 = arith.constant 0 : i32
    return %c0_i32, %c0_i32_0 : i32, i32
  }
  func.func @transform_2(%arg0: i32) -> (i32, i32) {
    %c0_i32 = arith.constant 0 : i32
    %c0_i32_0 = arith.constant 0 : i32
    %c0_i32_1 = arith.constant 0 : i32
    return %c0_i32, %c0_i32_0 : i32, i32
  }
  func.func @transform_3(%arg0: i32) -> (i32, i32) {
    %c0_i32 = arith.constant 0 : i32
    %c0_i32_0 = arith.constant 0 : i32
    %c0_i32_1 = arith.constant 0 : i32
    return %c0_i32, %c0_i32_0 : i32, i32
  }
  func.func @transform_4(%arg0: i32) -> (i32, i32) {
    %c0_i32 = arith.constant 0 : i32
    %c0_i32_0 = arith.constant 0 : i32
    %c0_i32_1 = arith.constant 0 : i32
    return %c0_i32, %c0_i32_0 : i32, i32
  }
  func.func @transform_5(%arg0: i32) -> (i32, i32) {
    %c0_i32 = arith.constant 0 : i32
    %c0_i32_0 = arith.constant 0 : i32
    return %arg0, %c0_i32 : i32, i32
  }
}

</mosaic_0001>

<bundles_post_ra>
// kernel: tpu_custom_call.1
= control target key start
LH: loop header
LB: loop body
LE: loop exit
PB: predicated region body
PF: predicated region fallthrough
CT: control target
= control target key end

     0   :  { %v265_v3 = vmov 0.0|0.0   ;;  %vm266_vm0 = vmmov 0   ;;  %v267_v6 = vmov 0.0   ;;  %s371_s0 = inlined_call_operand.vmem [shape: f32[4,128], index: 0, kind: input, shape index: {}]   ;;  %s372_s1 = inlined_call_operand.vmem [shape: f32[128,12], index: 1, kind: input, shape index: {}]   ;;  %s373_s2 = inlined_call_operand.vmem [shape: f32[1,12], index: 2, kind: input, shape index: {}]   ;;  %s374_s3 = inlined_call_operand.vmem [shape: f32[1,12], index: 3, kind: input, shape index: {}]   ;;  %s375_s4 = inlined_call_operand.vmem [shape: f32[1,12], index: 4, kind: input, shape index: {}]   ;;  %s376_s5 = inlined_call_operand.hbm [shape: f32[4,12], index: 5, kind: output, shape index: {}]  }
   0x1   :  { %v22_v0 = vld [vmem:[%s372_s1] sm:$0xff]  ;;  %v23_v1 = vld [vmem:[%s372_s1 + $0x8] sm:$0xff]  ;;  %v24_v2 = vld [vmem:[%s372_s1 + $0x10] sm:$0xff]  ;;  %209 = vmatprep.subr.bf16.mxu0 %v265_v3  ;;  %206 = vmatprep.mubr.msk.f32.mxu0 %vm266_vm0, %v267_v6 }
   0x2   :  { %v210_v4 = vpack.c.bf16 %v23_v1, %v22_v0  ;;  %v25_v5 = vld [vmem:[%s372_s1 + $0x18] sm:$0xff]  ;;  %v26_v8 = vld [vmem:[%s372_s1 + $0x20] sm:$0xff]  ;;  %v27_v9 = vld [vmem:[%s372_s1 + $0x28] sm:$0xff] }
   0x3   :  { %v213_v7 = vpack.c.bf16 %v25_v5, %v24_v2 }
   0x4   :  { %211 = vmatpush3.bf16.msra.mxu0 %v210_v4 }
   0x5   :  { %212 = vmatprep.subr.bf16.mxu0 %v265_v3 }
   0x6   :  { %10 = vsyncpa [#allocation3], 0  ;;  %v216_v10 = vpack.c.bf16 %v27_v9, %v26_v8  ;;  %v28_v11 = vld [vmem:[%s372_s1 + $0x30] sm:$0xff]  ;;  %v29_v12 = vld [vmem:[%s372_s1 + $0x38] sm:$0xff]  ;;  %s268_s6 = smov [#allocation2]   ;;  %vm137_vm1 = vcmask 93184  }
   0x7   :  { %v219_v13 = vpack.c.bf16 %v29_v12, %v28_v11  ;;  %v30_v14 = vld [vmem:[%s372_s1 + $0x40] sm:$0xff]  ;;  %v31_v15 = vld [vmem:[%s372_s1 + $0x48] sm:$0xff]  ;;  %v32_v17 = vld [vmem:[%s372_s1 + $0x50] sm:$0xff]  ;;  %s145_s7 = sshll.u32 %s268_s6, 4  ;;  %s146_s7 = int_to_ptr.vmem [resolvable:$true] %s145_s7 }
   0x8   :  { %214 = vmatpush3.bf16.msra.mxu0 %v213_v7  ;;  %v222_v16 = vpack.c.bf16 %v31_v15, %v30_v14  ;;  %v33_v18 = vld [vmem:[%s372_s1 + $0x58] sm:$0xff]  ;;  %v34_v20 = vld [vmem:[%s372_s1 + $0x60] sm:$0xff]  ;;  %v35_v21 = vld [vmem:[%s372_s1 + $0x68] sm:$0xff]  ;;  %p246_p1 = scmp.lt.s32.totalorder %s146_s7, %s146_s7 }
   0x9   :  { %215 = vmatprep.subr.bf16.mxu0 %v265_v3  ;;  %v225_v19 = vpack.c.bf16 %v33_v18, %v32_v17  ;;  %v228_v22 = vpack.c.bf16 %v35_v21, %v34_v20  ;;  %v36_v23 = vld [vmem:[%s372_s1 + $0x70] sm:$0xff]  ;;  %v37_v24 = vld [vmem:[%s372_s1 + $0x78] sm:$0xff]  ;;  %v21_v26 = vld [vmem:[%s371_s0] sm:$0xf] }
   0xa   :  { %v231_v25 = vpack.c.bf16 %v37_v24, %v36_v23  ;;  %v153_v27 = vld [vmem:[%s373_s2] ss:$0 sm:$0xff]  ;;  %s241_s2 = scalar_lea.vmem %s146_s7, 64 }
   0xb   :  { %v155_v34 = vld [vmem:[%s374_s3] ss:$0 sm:$0xff]  ;;  %p242_p0 = scmp.ne.s32.totalorder %s146_s7, %s241_s2  ;;  %p247_p2 = scmp.lt.s32.totalorder %s241_s2, %s241_s2 }
   0xc   :  { %217 = vmatpush3.bf16.msra.mxu0 %v216_v10  ;;  %v156_v36 = vld [vmem:[%s375_s4] ss:$0 sm:$0xff] }
   0xd   :  { %218 = vmatprep.subr.bf16.mxu0 %v265_v3  ;;  %p248_p3 = por %p247_p2, %p246_p1 }
   0xf   :  { %p249_p4 = pnand %p248_p3, %p242_p0 }
  0x10   :  { %220 = vmatpush3.bf16.msra.mxu0 %v219_v13 }
  0x11   :  { %221 = vmatprep.subr.bf16.mxu0 %v265_v3 }
  0x14   :  { %223 = vmatpush3.bf16.msra.mxu0 %v222_v16 }
  0x15   :  { %224 = vmatprep.subr.bf16.mxu0 %v265_v3 }
  0x18   :  { %226 = vmatpush3.bf16.msra.mxu0 %v225_v19 }
  0x19   :  { %227 = vmatprep.subr.bf16.mxu0 %v265_v3 }
  0x1c   :  { %229 = vmatpush3.bf16.msra.mxu0 %v228_v22 }
  0x1d   :  { %230 = vmatprep.subr.bf16.mxu0 %v265_v3 }
  0x20   :  { %232 = vmatpush3.bf16.msra.mxu0 %v231_v25 }
  0x23   :  { %207 = vmatmul.mubr.f32.vlgmr.msra.gmra.mrb[0].mxu0 %v21_v26 }
  0xf6   :  { %v111_v28 = vpop.f32.mrb[0].mxu0 }
  0xf7   :  { %v112_v29 = vadd.f32 %v153_v27, %v111_v28  ;;  %v208_v30 = vpop.f32.mrb[1].mxu0 }
  0xf9   :  { %v154_v31 = vmul.f32 -1.442695, %v112_v29 }
  0xfb   :  { %237 = vpow2.f32 %v154_v31 }
 0x105   :  { %v238_v32 = vpop.eup %237 }
 0x106   :  { %v118_v33 = vadd.f32 1.0, %v238_v32 }
 0x108   :  { %239 = vrcp.f32 %v118_v33 }
 0x112   :  { %v240_v35 = vpop.eup %239 }
 0x113   :  { %v128_v37 = vmul.f32 %v240_v35, %v155_v34 }
 0x115   :  { %v136_v38 = vadd.f32 %v156_v36, %v128_v37 }
 0x117   :  { %138 = vst.msk [vmem:[#allocation2] sm:$0xf] %vm137_vm1, %v136_v38 }
 0x118   :  { %252 = shalt.err (!%p249_p4)
}
 0x119   :  { %s253_s9 = scalar_lea.hbm %s376_s5, 64 }
 0x11a   :  { %p254_p5 = scmp.ne.s32.totalorder %s376_s5, %s253_s9  ;;  %p257_p6 = scmp.lt.u32.totalorder %s253_s9, %s376_s5 }
 0x11c   :  { %p259_p7 = pnand %p257_p6, %p254_p5 }
 0x11e   :  { %262 = shalt.err (!%p259_p7)
}
 0x11f   :  { %148 = dma.vmem_to_hbm [thread:$0]  %s146_s7, 64, %s376_s5, [#allocation3]  }
 0x120   :  { %263 = dma.done.wait [#allocation3], 64  }
 0x121   :  { %264 = vsyncadd [#allocation3], 4294967232 }
 0x122   :  { %152 = vsyncpa [#allocation3], 1 }

</bundles_post_ra>
